<compile_context>
chip_gen: v6e
topology: v6e:2x2x1
jax: 0.10.0
libtpu: 0.0.40
codegen_flags: <defaults>
</compile_context>

<pallas_src>
import math
import functools

import jax
import jax.numpy as jnp
from jax.experimental import pallas as pl
from jax.experimental.pallas import tpu as pltpu


def _pick_tile(dim, target):
    """Largest tile <= target that evenly divides `dim` (whole dim if it is small)."""
    if dim <= target:
        return dim
    if dim % target == 0:
        return target
    for t in range(target, 0, -1):
        if dim % t == 0:
            return t
    return dim


# ----------------------------- tiled linear projection -----------------------------
def _linear_kernel(x_ref, w_ref, b_ref, o_ref, acc_ref):
    k = pl.program_id(2)

    @pl.when(k == 0)
    def _():
        acc_ref[...] = jnp.zeros_like(acc_ref)

    # Canonical (M,K) x (K,N) MXU contraction, fp32 accumulation.
    acc_ref[...] += jnp.dot(x_ref[...], w_ref[...],
                            preferred_element_type=jnp.float32)

    @pl.when(k == pl.num_programs(2) - 1)
    def _():
        o_ref[...] = (acc_ref[...] + b_ref[...].astype(jnp.float32)).astype(o_ref.dtype)


def linear(x, w_t, b, *, tm=256, tn=256, tk=512):
    """y = x @ w_t + b with x:(M,K), w_t:(K,N) (pre-transposed weight), b:(N,)."""
    M, K = x.shape
    K2, N = w_t.shape
    assert K == K2
    tm = _pick_tile(M, tm)
    tn = _pick_tile(N, tn)
    tk = _pick_tile(K, tk)
    grid = (M // tm, N // tn, K // tk)
    itemsize = jnp.dtype(x.dtype).itemsize
    cost = pl.CostEstimate(
        flops=2 * M * N * K,
        transcendentals=0,
        bytes_accessed=int((M * K + K * N + M * N + N) * itemsize),
    )
    return pl.pallas_call(
        _linear_kernel,
        out_shape=jax.ShapeDtypeStruct((M, N), x.dtype),
        grid_spec=pltpu.PrefetchScalarGridSpec(
            num_scalar_prefetch=0,
            grid=grid,
            in_specs=[
                pl.BlockSpec((tm, tk), lambda i, j, k: (i, k)),
                pl.BlockSpec((tk, tn), lambda i, j, k: (k, j)),
                pl.BlockSpec((1, tn), lambda i, j, k: (0, j)),
            ],
            out_specs=pl.BlockSpec((tm, tn), lambda i, j, k: (i, j)),
            scratch_shapes=[pltpu.VMEM((tm, tn), jnp.float32)],
        ),
        compiler_params=pltpu.CompilerParams(
            dimension_semantics=("parallel", "parallel", "arbitrary"),
            vmem_limit_bytes=64 * 1024 * 1024,
        ),
        cost_estimate=cost,
    )(x, w_t, b.reshape(1, N))


# ------------------------------ flash attention -------------------------------
def _flash_attn_kernel(q_ref, k_ref, v_ref, cos_q_ref, sin_q_ref, cos_k_ref, sin_k_ref,
                       mask_ref, o_ref, qr_ref, m_ref, l_ref, acc_ref, *, scale, half):
    ki = pl.program_id(3)

    def rotate_half(x):  # concat(-x[:, D/2:], x[:, :D/2])
        return jnp.concatenate([-x[:, half:], x[:, :half]], axis=-1)

    @pl.when(ki == 0)
    def _():
        # Rotate Q once per (b, h, q-tile) and cache it across all KV tiles.
        q = q_ref[0, 0]                                            # (tq, D)
        qr_ref[...] = (q * cos_q_ref[0] +
                       rotate_half(q) * sin_q_ref[0]).astype(qr_ref.dtype)
        m_ref[...] = jnp.full_like(m_ref, -jnp.inf)
        l_ref[...] = jnp.zeros_like(l_ref)
        acc_ref[...] = jnp.zeros_like(acc_ref)

    k = k_ref[0, 0]                                                # (tkv, D)
    kr = (k * cos_k_ref[0] + rotate_half(k) * sin_k_ref[0]).astype(k.dtype)
    v = v_ref[0, 0]                                                # (tkv, D)

    # scores = (q_rot @ k_rot^T) / sqrt(D) + mask ; fp32 accumulation on the MXU,
    # matmul inputs stay in the model dtype (bf16 in production).
    s = jax.lax.dot_general(qr_ref[...], kr, (((1,), (1,)), ((), ())),
                            preferred_element_type=jnp.float32)
    s = s * scale + mask_ref[0, 0].astype(jnp.float32)             # (tq, tkv)

    # Online softmax (fp32 running max / denom / accumulator).
    m_prev = m_ref[...]
    m_new = jnp.maximum(m_prev, jnp.max(s, axis=-1, keepdims=True))
    alpha = jnp.exp(m_prev - m_new)
    p = jnp.exp(s - m_new)
    l_ref[...] = alpha * l_ref[...] + jnp.sum(p, axis=-1, keepdims=True)
    acc_ref[...] = alpha * acc_ref[...] + jnp.dot(
        p.astype(v.dtype), v, preferred_element_type=jnp.float32)
    m_ref[...] = m_new

    @pl.when(ki == pl.num_programs(3) - 1)
    def _():
        # One reciprocal per row, broadcast-multiplied over D.
        inv = 1.0 / l_ref[...]
        o_ref[0] = (acc_ref[...] * inv).astype(o_ref.dtype)


def attention(q, k, v, cos, sin, mask, *, num_kv_groups, tq=256, tkv=256):
    """q:(B,nH,S,D), k/v:(B,nKV,Skv,D), cos/sin:(B,S,D), mask:(B,1,S,Skv) -> (B,S,nH*D)."""
    B, nH, S, D = q.shape
    Skv = k.shape[2]
    tq = _pick_tile(S, tq)
    tkv = _pick_tile(Skv, tkv)
    grid = (B, nH, S // tq, Skv // tkv)
    H = nH * D
    g = num_kv_groups
    kern = functools.partial(_flash_attn_kernel, scale=1.0 / math.sqrt(D), half=D // 2)
    itemsize = jnp.dtype(q.dtype).itemsize
    cost = pl.CostEstimate(
        flops=int(4 * B * nH * S * Skv * D),
        transcendentals=int(B * nH * S * Skv),
        bytes_accessed=int((q.size + k.size + v.size + 2 * cos.size + 2 * sin.size
                            + mask.size + B * S * H) * itemsize),
    )
    return pl.pallas_call(
        kern,
        out_shape=jax.ShapeDtypeStruct((B, S, H), q.dtype),
        grid_spec=pltpu.PrefetchScalarGridSpec(
            num_scalar_prefetch=0,
            grid=grid,
            in_specs=[
                pl.BlockSpec((1, 1, tq, D), lambda b, h, qi, ki: (b, h, qi, 0)),
                pl.BlockSpec((1, 1, tkv, D), lambda b, h, qi, ki: (b, h // g, ki, 0)),
                pl.BlockSpec((1, 1, tkv, D), lambda b, h, qi, ki: (b, h // g, ki, 0)),
                pl.BlockSpec((1, tq, D), lambda b, h, qi, ki: (b, qi, 0)),   # cos (q rows)
                pl.BlockSpec((1, tq, D), lambda b, h, qi, ki: (b, qi, 0)),   # sin (q rows)
                pl.BlockSpec((1, tkv, D), lambda b, h, qi, ki: (b, ki, 0)),  # cos (k rows)
                pl.BlockSpec((1, tkv, D), lambda b, h, qi, ki: (b, ki, 0)),  # sin (k rows)
                pl.BlockSpec((1, 1, tq, tkv), lambda b, h, qi, ki: (b, 0, qi, ki)),
            ],
            # Write directly into (B, S, H) at column offset h*D (lane-aligned for
            # production head_dim=128) -> no transpose before o_proj.
            out_specs=pl.BlockSpec((1, tq, D), lambda b, h, qi, ki: (b, qi, h)),
            scratch_shapes=[
                pltpu.VMEM((tq, D), q.dtype),        # rotated Q, cached across KV tiles
                pltpu.VMEM((tq, 1), jnp.float32),    # running row max
                pltpu.VMEM((tq, 1), jnp.float32),    # running softmax denominator
                pltpu.VMEM((tq, D), jnp.float32),    # fp32 output accumulator
            ],
        ),
        compiler_params=pltpu.CompilerParams(
            dimension_semantics=("parallel", "parallel", "parallel", "arbitrary"),
            vmem_limit_bytes=64 * 1024 * 1024,
        ),
        cost_estimate=cost,
    )(q, k, v, cos, sin, cos, sin, mask)


# ------------------------------ module wrapper --------------------------------
def qwen2_attention_forward(hidden_states, cos, sin, attn_mask, params, *,
                            num_heads, num_kv_heads):
    B, S, H = hidden_states.shape
    D = H // num_heads
    groups = num_heads // num_kv_heads
    kv_dim = num_kv_heads * D

    # Fused QKV projection: one tiled matmul, activation read from HBM once.
    # (In a real model the fused, pre-transposed weight would be stored this way.)
    w_qkv_t = jnp.concatenate([params["wq"], params["wk"], params["wv"]], axis=0).T
    b_qkv = jnp.concatenate([params["bq"], params["bk"], params["bv"]], axis=0)

    x2d = hidden_states.reshape(B * S, H)
    qkv = linear(x2d, w_qkv_t, b_qkv)                       # (B*S, H + 2*kv_dim)

    q = qkv[:, :H].reshape(B, S, num_heads, D).transpose(0, 2, 1, 3)
    k = qkv[:, H:H + kv_dim].reshape(B, S, num_kv_heads, D).transpose(0, 2, 1, 3)
    v = qkv[:, H + kv_dim:].reshape(B, S, num_kv_heads, D).transpose(0, 2, 1, 3)

    # Flash attention (RoPE + GQA + masked softmax + PV) -> already (B, S, H).
    attn = attention(q, k, v, cos, sin, attn_mask, num_kv_groups=groups)

    out = linear(attn.reshape(B * S, H), params["wo"].T, params["bo"])  # o_proj: bias 0
    return out.reshape(B, S, H)


# ------------------------------- pure JAX ref ----------------------------------
def _reference(hidden_states, cos, sin, attn_mask, params, *, num_heads, num_kv_heads):
    B, S, H = hidden_states.shape
    D = H // num_heads
    groups = num_heads // num_kv_heads

    def lin(x, w, b):
        return x @ w.T + b

    q = lin(hidden_states, params["wq"], params["bq"]).reshape(B, S, num_heads, D).transpose(0, 2, 1, 3)
    k = lin(hidden_states, params["wk"], params["bk"]).reshape(B, S, num_kv_heads, D).transpose(0, 2, 1, 3)
    v = lin(hidden_states, params["wv"], params["bv"]).reshape(B, S, num_kv_heads, D).transpose(0, 2, 1, 3)

    def rot_half(x):
        return jnp.concatenate([-x[..., D // 2:], x[..., :D // 2]], axis=-1)

    c = cos[:, None, :, :]
    s = sin[:, None, :, :]
    q = q * c + rot_half(q) * s
    k = k * c + rot_half(k) * s

    k = jnp.repeat(k, groups, axis=1)
    v = jnp.repeat(v, groups, axis=1)

    scores = jnp.einsum("bhqd,bhkd->bhqk", q, k) / math.sqrt(D) + attn_mask
    p = jax.nn.softmax(scores.astype(jnp.float32), axis=-1).astype(q.dtype)
    o = jnp.einsum("bhqk,bhkd->bhqd", p, v)
    o = o.transpose(0, 2, 1, 3).reshape(B, S, H)
    return lin(o, params["wo"], params["bo"])


# ----------------------------------- main --------------------------------------
if __name__ == "__main__":
    # Small Qwen2-like config.
    B, S, H = 2, 8, 32
    num_heads = 4
    num_kv_heads = 2
    D = H // num_heads
    rope_theta = 10000.0
    dtype = jnp.float32

    key = jax.random.PRNGKey(0)
    ks = jax.random.split(key, 8)
    hidden_states = jax.random.normal(ks[0], (B, S, H), dtype)

    kv_dim = num_kv_heads * D
    params = {
        "wq": 0.05 * jax.random.normal(ks[1], (H, H), dtype),
        "bq": 0.01 * jax.random.normal(ks[2], (H,), dtype),
        "wk": 0.05 * jax.random.normal(ks[3], (kv_dim, H), dtype),
        "bk": 0.01 * jax.random.normal(ks[4], (kv_dim,), dtype),
        "wv": 0.05 * jax.random.normal(ks[5], (kv_dim, H), dtype),
        "bv": 0.01 * jax.random.normal(ks[6], (kv_dim,), dtype),
        "wo": 0.05 * jax.random.normal(ks[7], (H, H), dtype),
        "bo": jnp.zeros((H,), dtype),                # o_proj: bias=False
    }

    # Rotary embeddings (Qwen2RotaryEmbedding, attention_scaling == 1.0).
    inv_freq = 1.0 / (rope_theta ** (jnp.arange(0, D, 2, dtype=jnp.float32) / D))
    pos = jnp.arange(S, dtype=jnp.float32)
    freqs = pos[:, None] * inv_freq[None, :]         # (S, D/2)
    emb = jnp.concatenate([freqs, freqs], axis=-1)   # (S, D)
    cos = jnp.broadcast_to(jnp.cos(emb), (B, S, D)).astype(dtype)
    sin = jnp.broadcast_to(jnp.sin(emb), (B, S, D)).astype(dtype)

    # Additive causal mask (B, 1, S, S).
    row = jnp.arange(S)[:, None]
    col = jnp.arange(S)[None, :]
    causal = jnp.where(col <= row, 0.0, -1e9).astype(dtype)
    attn_mask = jnp.broadcast_to(causal, (B, 1, S, S))

    out = qwen2_attention_forward(
        hidden_states, cos, sin, attn_mask, params,
        num_heads=num_heads, num_kv_heads=num_kv_heads)
    out = jax.block_until_ready(out)

    ref = _reference(
        hidden_states, cos, sin, attn_mask, params,
        num_heads=num_heads, num_kv_heads=num_kv_heads)

    assert out.shape == (B, S, H)
    assert jnp.allclose(out, ref, atol=1e-3, rtol=1e-3), (
        float(jnp.max(jnp.abs(out - ref))))
    print("KERNEL_OK")
</pallas_src>

<mosaic_0001>
module attributes {stable_mosaic.version = 11 : i64} {
  func.func @_linear_kernel(%arg0: i32, %arg1: i32, %arg2: i32, %arg3: memref<16x32xf32, #tpu.memory_space<vmem>>, %arg4: memref<32x64xf32, #tpu.memory_space<vmem>>, %arg5: memref<1x64xf32, #tpu.memory_space<vmem>>, %arg6: memref<16x64xf32, #tpu.memory_space<vmem>>, %arg7: memref<16x64xf32, #tpu.memory_space<vmem>>) attributes {dimension_semantics = [#tpu.dimension_semantics<parallel>, #tpu.dimension_semantics<parallel>, #tpu.dimension_semantics<arbitrary>], iteration_bounds = array<i64: 1, 1, 1>, scalar_prefetch = 0 : i64, scratch_operands = 1 : i64, tpu.core_type = #tpu.core_type<tc>, window_params = [{transform_indices = @transform_0, window_bounds = array<i64: 16, 32>}, {transform_indices = @transform_1, window_bounds = array<i64: 32, 64>}, {transform_indices = @transform_2, window_bounds = array<i64: 1, 64>}, {transform_indices = @transform_3, window_bounds = array<i64: 16, 64>}]} {
    %c0_i32 = arith.constant 0 : i32
    %0 = arith.cmpi eq, %arg2, %c0_i32 : i32
    %1 = arith.extui %0 : i1 to i32
    %c0_i32_0 = arith.constant 0 : i32
    %2 = arith.cmpi ne, %1, %c0_i32_0 : i32
    scf.if %2 {
      %cst_10 = arith.constant 0.000000e+00 : f32
      %12 = vector.broadcast %cst_10 : f32 to vector<16x64xf32>
      %c0_11 = arith.constant 0 : index
      %c0_12 = arith.constant 0 : index
      %13 = vector.load %arg7[%c0_11, %c0_12] : memref<16x64xf32, #tpu.memory_space<vmem>>, vector<16x64xf32>
      tpu.vector_store %arg7[%c0_11, %c0_12], %12 {strides = array<i32>} : memref<16x64xf32, #tpu.memory_space<vmem>>, vector<16x64xf32>,
    } else {
    }
    %c0 = arith.constant 0 : index
    %c0_1 = arith.constant 0 : index
    %3 = vector.load %arg7[%c0, %c0_1] : memref<16x64xf32, #tpu.memory_space<vmem>>, vector<16x64xf32>
    %c0_2 = arith.constant 0 : index
    %c0_3 = arith.constant 0 : index
    %4 = vector.load %arg3[%c0_2, %c0_3] : memref<16x32xf32, #tpu.memory_space<vmem>>, vector<16x32xf32>
    %c0_4 = arith.constant 0 : index
    %c0_5 = arith.constant 0 : index
    %5 = vector.load %arg4[%c0_4, %c0_5] : memref<32x64xf32, #tpu.memory_space<vmem>>, vector<32x64xf32>
    %cst = arith.constant dense<0.000000e+00> : vector<16x64xf32>
    %6 = tpu.matmul %4, %5, %cst {dimension_numbers = #tpu.dot_dimension_numbers<[1], [0], [0], [1], [0, 0, 1, 1], [], []>} : vector<16x32xf32>, vector<32x64xf32>, vector<16x64xf32> -> vector<16x64xf32>
    %7 = arith.addf %3, %6 : vector<16x64xf32>
    %c0_6 = arith.constant 0 : index
    %c0_7 = arith.constant 0 : index
    %8 = vector.load %arg7[%c0_6, %c0_7] : memref<16x64xf32, #tpu.memory_space<vmem>>, vector<16x64xf32>
    tpu.vector_store %arg7[%c0_6, %c0_7], %7 {strides = array<i32>} : memref<16x64xf32, #tpu.memory_space<vmem>>, vector<16x64xf32>,
    %c0_i32_8 = arith.constant 0 : i32
    %9 = arith.cmpi eq, %arg2, %c0_i32_8 : i32
    %10 = arith.extui %9 : i1 to i32
    %c0_i32_9 = arith.constant 0 : i32
    %11 = arith.cmpi ne, %10, %c0_i32_9 : i32
    scf.if %11 {
      %c0_10 = arith.constant 0 : index
      %c0_11 = arith.constant 0 : index
      %12 = vector.load %arg7[%c0_10, %c0_11] : memref<16x64xf32, #tpu.memory_space<vmem>>, vector<16x64xf32>
      %c0_12 = arith.constant 0 : index
      %c0_13 = arith.constant 0 : index
      %13 = vector.load %arg5[%c0_12, %c0_13] : memref<1x64xf32, #tpu.memory_space<vmem>>, vector<1x64xf32>
      %14 = vector.broadcast %13 : vector<1x64xf32> to vector<16x64xf32>
      %15 = arith.addf %12, %14 : vector<16x64xf32>
      %c0_14 = arith.constant 0 : index
      %c0_15 = arith.constant 0 : index
      %16 = vector.load %arg6[%c0_14, %c0_15] : memref<16x64xf32, #tpu.memory_space<vmem>>, vector<16x64xf32>
      tpu.vector_store %arg6[%c0_14, %c0_15], %15 {strides = array<i32>} : memref<16x64xf32, #tpu.memory_space<vmem>>, vector<16x64xf32>,
    } else {
    }
    return
  }
  func.func @transform_0(%arg0: i32, %arg1: i32, %arg2: i32) -> (i32, i32) {
    %c0_i32 = arith.constant 0 : i32
    return %arg0, %arg2 : i32, i32
  }
  func.func @transform_1(%arg0: i32, %arg1: i32, %arg2: i32) -> (i32, i32) {
    %c0_i32 = arith.constant 0 : i32
    return %arg2, %arg1 : i32, i32
  }
  func.func @transform_2(%arg0: i32, %arg1: i32, %arg2: i32) -> (i32, i32) {
    %c0_i32 = arith.constant 0 : i32
    %c0_i32_0 = arith.constant 0 : i32
    return %c0_i32, %arg1 : i32, i32
  }
  func.func @transform_3(%arg0: i32, %arg1: i32, %arg2: i32) -> (i32, i32) {
    %c0_i32 = arith.constant 0 : i32
    return %arg0, %arg1 : i32, i32
  }
}

</mosaic_0001>

<bundles_post_ra>
// kernel: tpu_custom_call.1
= control target key start
LH: loop header
LB: loop body
LE: loop exit
PB: predicated region body
PF: predicated region fallthrough
CT: control target
= control target key end

     0   :  { %8 = vsyncpa [#allocation4], 0  ;;  %s326_s0 = inlined_call_operand.hbm [shape: f32[16,32], index: 0, kind: input, shape index: {}]   ;;  %s327_s1 = inlined_call_operand.hbm [shape: f32[32,64], index: 1, kind: input, shape index: {}]   ;;  %s328_s2 = inlined_call_operand.vmem [shape: f32[1,64], index: 2, kind: input, shape index: {}]   ;;  %s329_s3 = inlined_call_operand.hbm [shape: f32[16,64], index: 3, kind: output, shape index: {}]  }
   0x1   :  { %9 = vsyncpa [#allocation7], 0 }
   0x2   :  { %10 = vsyncpa [#allocation5], 0  ;;  %s271_s12 = smov [#allocation3]  }
   0x3   :  { %s16_s13 = sshll.u32 %s271_s12, 4  ;;  %s17_s13 = int_to_ptr.vmem [resolvable:$true] %s16_s13 }
   0x4   :  { %s213_s14 = scalar_lea.vmem %s17_s13, 256  ;;  %p218_p1 = scmp.lt.s32.totalorder %s17_s13, %s17_s13 }
   0x5   :  { %p214_p0 = scmp.ne.s32.totalorder %s17_s13, %s213_s14  ;;  %p219_p2 = scmp.lt.s32.totalorder %s213_s14, %s213_s14 }
   0x7   :  { %p220_p3 = por %p219_p2, %p218_p1 }
   0x9   :  { %p221_p4 = pnand %p220_p3, %p214_p0 }
   0xb   :  { %224 = shalt.err (!%p221_p4)
}
   0xc   :  { %s272_s15 = smov 128   ;;  %s273_s16 = smov 8  }
   0xd   :  { %22 = dma.hbm_to_vmem [thread:$0]  %s326_s0, 256, %s17_s13, [#allocation4], %s272_s15, %s272_s15, %s273_s16  }
   0xe   :  { %s274_s19 = smov [#allocation6]  }
   0xf   :  { %s28_s20 = sshll.u32 %s274_s19, 4  ;;  %s29_s20 = int_to_ptr.vmem [resolvable:$true] %s28_s20 }
  0x10   :  { %s233_s21 = scalar_lea.vmem %s29_s20, 512  ;;  %p238_p6 = scmp.lt.s32.totalorder %s29_s20, %s29_s20 }
  0x11   :  { %p234_p5 = scmp.ne.s32.totalorder %s29_s20, %s233_s21  ;;  %p239_p7 = scmp.lt.s32.totalorder %s233_s21, %s233_s21 }
  0x13   :  { %p240_p8 = por %p239_p7, %p238_p6 }
  0x15   :  { %p241_p9 = pnand %p240_p8, %p234_p5 }
  0x17   :  { %244 = shalt.err (!%p241_p9)
}
  0x18   :  { %34 = dma.hbm_to_vmem [thread:$0]  %s327_s1, 512, %s29_s20, [#allocation7], %s272_s15, %s272_s15, %s273_s16  }
  0x19   :  { %265 = dma.done.wait [#allocation4], 256  }
  0x1a   :  { %266 = vsyncadd [#allocation4], 4294967040 }
  0x1b   :  { %267 = dma.done.wait [#allocation7], 512  }
  0x1c   :  { %268 = vsyncadd [#allocation7], 4294966784  ;;  %vm47_vm0 = vcmask 523264   ;;  %v275_v0 = vmov 0.0   ;;  %vm58_vm1 = vcmask 261120   ;;  %v57_v1 = vld [vmem:[#allocation6 + $0x18] sm:$0xff] }
  0x1d   :  { %49 = vst.msk [vmem:[#allocation2 + $0x8] sm:$0xff] %vm47_vm0, %v275_v0  ;;  %48 = vst.msk [vmem:[#allocation2] sm:$0xff] %vm47_vm0, %v275_v0  ;;  %v56_v2 = vld [vmem:[#allocation6 + $0x10] sm:$0xff]  ;;  %188 = vmatprep.subr.mxu0 %v57_v1  ;;  %v55_v4 = vld [vmem:[#allocation6 + $0x8] sm:$0xff]  ;;  %s276_s24 = smov [#allocation8]  }
  0x1e   :  { %v52_v3 = vld [vmem:[#allocation3] sm:$0xff]  ;;  %189 = vmatpush3.msra.mxu0 %v57_v1  ;;  %v54_v5 = vld [vmem:[#allocation6] sm:$0xff]  ;;  %v53_v6 = vld [vmem:[#allocation3 + $0x8] sm:$0xff]  ;;  %s166_s25 = sshll.u32 %s276_s24, 4  ;;  %s167_s25 = int_to_ptr.vmem [resolvable:$true] %s166_s25 }
  0x1f   :  { %196 = vmatprep.mubr.msk.f32.mxu0 %vm58_vm1, %v52_v3  ;;  %190 = vmatprep.subr.mxu0 %v56_v2  ;;  %v181_v13 = vld [vmem:[%s328_s2] ss:$0 sm:$0xff]  ;;  %s245_s26 = scalar_lea.vmem %s167_s25, 256  ;;  %p250_p11 = scmp.lt.s32.totalorder %s167_s25, %s167_s25 }
  0x20   :  { %191 = vmatpush3.msra.mxu0 %v56_v2  ;;  %p246_p10 = scmp.ne.s32.totalorder %s167_s25, %s245_s26  ;;  %p251_p12 = scmp.lt.s32.totalorder %s245_s26, %s245_s26 }
  0x21   :  { %192 = vmatprep.subr.mxu0 %v55_v4 }
  0x22   :  { %193 = vmatpush3.msra.mxu0 %v55_v4  ;;  %p252_p13 = por %p251_p12, %p250_p11 }
  0x23   :  { %194 = vmatprep.subr.mxu0 %v54_v5 }
  0x24   :  { %195 = vmatpush3.msra.mxu0 %v54_v5  ;;  %v51_v7 = vld [vmem:[#allocation2 + $0x8] sm:$0xff]  ;;  %v50_v9 = vld [vmem:[#allocation2] sm:$0xff]  ;;  %p253_p0 = pnand %p252_p13, %p246_p10 }
  0x25   :  { %197 = vmatmul.mubr.msk.f32.vlgmr.msra.gmra.mxu0 %vm58_vm1, %v53_v6 }
  0xe5   :  { %v198_v8 = vpop.f32.mrf.mxu0 }
  0xe6   :  { %v141_v10 = vadd.f32 %v198_v8, %v51_v7 }
  0xe7   :  { %v131_v11 = vpop.f32.mrf.mxu0 }
  0xe8   :  { %144 = vst.msk [vmem:[#allocation2 + $0x8] sm:$0xff] %vm47_vm0, %v141_v10  ;;  %v140_v12 = vadd.f32 %v131_v11, %v50_v9 }
  0xea   :  { %143 = vst.msk [vmem:[#allocation2] sm:$0xff] %vm47_vm0, %v140_v12 }
  0xef   :  { %v149_v14 = vld [vmem:[#allocation2 + $0x8] sm:$0xff] }
  0xf0   :  { %v158_v15 = vadd.f32 %v181_v13, %v149_v14 }
  0xf1   :  { %v148_v16 = vld [vmem:[#allocation2] sm:$0xff] }
  0xf2   :  { %v157_v17 = vadd.f32 %v181_v13, %v148_v16  ;;  %160 = vst.msk [vmem:[#allocation8 + $0x8] sm:$0xff] %vm47_vm0, %v158_v15 }
  0xf4   :  { %159 = vst.msk [vmem:[#allocation8] sm:$0xff] %vm47_vm0, %v157_v17 }
  0xf5   :  { %256 = shalt.err (!%p253_p0)
}
  0xf6   :  { %172 = dma.vmem_to_hbm [thread:$0]  %s167_s25, 256, %s329_s3, [#allocation5], %s272_s15, %s272_s15, %s273_s16  }
  0xf7   :  { %269 = dma.done.wait [#allocation5], 256  }
  0xf8   :  { %270 = vsyncadd [#allocation5], 4294967040 }
  0xf9   :  { %176 = vsyncpa [#allocation4], 1 }
  0xfa   :  { %177 = vsyncpa [#allocation7], 1 }
  0xfb   :  { %178 = vsyncpa [#allocation5], 1 }

</bundles_post_ra>
